<compile_context>
chip_gen: v7x
topology: tpu7x:2x2x1
jax: 0.10.0
libtpu: 0.0.40
codegen_flags: <defaults>
</compile_context>

<pallas_src>
import functools
import math

import jax
import jax.numpy as jnp
from jax.experimental import pallas as pl
from jax.experimental.pallas import tpu as pltpu

_EPS = 1e-8            # matches torch.nn.CosineSimilarity default eps
_EPS_SQ = _EPS * _EPS  # clamp squared norms -> identical to max(||v||, eps)

_VMEM_LIMIT = 48 * 1024 * 1024   # scoped VMEM: < 64 MiB/TC (v7x), << 128 MiB (v5e/v6e)
_PIPE_BUDGET = 24 * 1024 * 1024  # target bytes for double-buffered pipeline blocks


def _cdiv(a, b):
    return -(-a // b)


def _round_up(v, m):
    return ((v + m - 1) // m) * m


def _sublane_tile(n, cap):
    """Tile for a second-to-last (sublane) dim: multiple of 8, or the full dim if < 8."""
    if n < 8:
        return n
    t = min(cap, _round_up(n, 8))
    return max(8, (t // 8) * 8)


def _lane_tile(n, cap):
    """Tile for a last (lane) dim: multiple of 128, or the full dim if < 128."""
    if n < 128:
        return n
    t = min(cap, _round_up(n, 128))
    return max(128, (t // 128) * 128)


def _row_tile(n, bytes_per_row, max_tile=1024):
    """Rows-per-block for the row-wise kernels (VMEM-budgeted, lane-dense stores)."""
    cap = max_tile
    while cap > 8 and 2 * cap * bytes_per_row > _PIPE_BUDGET:  # 2 = double buffering
        cap //= 2
    if n < 8:
        return n
    t = min(cap, _round_up(n, 8))
    if n >= 128 and t >= 128:
        t = (t // 128) * 128        # unmasked lane-dense (1, tile) stores
    else:
        t = (t // 8) * 8
    t = max(8, t)
    # Keep >=2 blocks along the parallel axis when possible (v7x: 2 TensorCores).
    if _cdiv(n, t) == 1 and n >= 256:
        t = max(128, _round_up(_cdiv(n, 2), 128))
    return t


# ---------------------------------------------------------------------------
# Kernel 0: inverse row norms.  (R, H) -> (R,) f32 of 1 / max(||row||, eps).
# Computed once so the matmul kernel never redoes per-tile norm reductions.
# ---------------------------------------------------------------------------
def _inv_norm_kernel(r_ref, o_ref):
    r = r_ref[...].astype(jnp.float32)                             # (tile, H)
    sq = jnp.maximum(jnp.sum(r * r, axis=-1), _EPS_SQ)             # (tile,)
    o_ref[...] = jax.lax.rsqrt(sq).reshape(1, -1)                  # lane-dense (1, tile)


def _inv_norms(rmat):
    r, h = rmat.shape
    tile = _row_tile(r, h * rmat.dtype.itemsize + 4)
    g = _cdiv(r, tile)
    out = pl.pallas_call(
        _inv_norm_kernel,
        out_shape=jax.ShapeDtypeStruct((g, tile), jnp.float32),
        grid_spec=pltpu.PrefetchScalarGridSpec(
            num_scalar_prefetch=0,
            grid=(g,),
            in_specs=[pl.BlockSpec((tile, h), lambda i: (i, 0))],
            out_specs=pl.BlockSpec((1, tile), lambda i: (i, 0)),
        ),
        compiler_params=pltpu.CompilerParams(
            dimension_semantics=("parallel",),
            vmem_limit_bytes=_VMEM_LIMIT,
        ),
    )(rmat)
    return out.reshape(-1)[:r]       # garbage from partial boundary block sliced off


# ---------------------------------------------------------------------------
# Kernel 1: outer-product cosine similarity.  x:(M,H), y:(N,H) -> (M,N).
# Single bf16 MXU pass with f32 accumulate; scaling uses precomputed inverse
# norms (1/temp already folded into xinv).
# ---------------------------------------------------------------------------
def _cosine_outer_kernel(x_ref, y_ref, xinv_ref, yinv_ref, o_ref):
    xb = x_ref[...].astype(jnp.bfloat16)            # (tm, H)
    yb = y_ref[...].astype(jnp.bfloat16)            # (tn, H)
    dots = jax.lax.dot_general(
        xb, yb,
        dimension_numbers=(((1,), (1,)), ((), ())),
        preferred_element_type=jnp.float32)          # (tm, tn) f32 accumulate
    o_ref[...] = dots * xinv_ref[...] * yinv_ref[...]   # (tm,1) and (1,tn) broadcasts


def _cosine_outer(xm, yn, xinv_col, yinv_row):
    m, h = xm.shape
    n = yn.shape[0]
    bx, by = xm.dtype.itemsize, yn.dtype.itemsize

    tm = _sublane_tile(m, 256)
    tn = _lane_tile(n, 256)

    # VMEM budget: double-buffered x/y/xinv/yinv blocks + f32 output tiles.
    def _ws(a, b):
        return 2 * (a * h * bx + b * h * by + a * 4 + b * 4 + a * b * 4)

    while _ws(tm, tn) > _PIPE_BUDGET:
        if tn > 128:
            tn = max(128, (tn // 2) // 128 * 128)
        elif tm > 8:
            tm = max(8, (tm // 2) // 8 * 8)
        else:
            break
    # TODO(synk): for very large H, add a K-axis grid over H with an f32 accumulator
    # scratch (init at k==0, finalize at k==last) instead of only shrinking tm/tn.

    # Keep >=2 blocks along a parallel axis so both v7x TensorCores get work.
    if _cdiv(m, tm) == 1 and _cdiv(n, tn) == 1:
        if n >= 256:
            tn = max(128, _round_up(_cdiv(n, 2), 128))
        elif m >= 16:
            tm = max(8, _round_up(_cdiv(m, 2), 8))

    grid = (_cdiv(m, tm), _cdiv(n, tn))
    out = pl.pallas_call(
        _cosine_outer_kernel,
        out_shape=jax.ShapeDtypeStruct((m, n), jnp.float32),
        grid_spec=pltpu.PrefetchScalarGridSpec(
            num_scalar_prefetch=0,
            grid=grid,
            in_specs=[
                pl.BlockSpec((tm, h), lambda i, j: (i, 0)),   # x rows (resident over j)
                pl.BlockSpec((tn, h), lambda i, j: (j, 0)),   # y rows
                pl.BlockSpec((tm, 1), lambda i, j: (i, 0)),   # 1/(temp*||x||)
                pl.BlockSpec((1, tn), lambda i, j: (0, j)),   # 1/||y||
            ],
            out_specs=pl.BlockSpec((tm, tn), lambda i, j: (i, j)),
        ),
        compiler_params=pltpu.CompilerParams(
            dimension_semantics=("parallel", "parallel"),
            vmem_limit_bytes=_VMEM_LIMIT,
        ),
    )(xm, yn, xinv_col, yinv_row)
    return out


# ---------------------------------------------------------------------------
# Kernel 2: row-wise cosine similarity for same-shape / general inputs.
# ---------------------------------------------------------------------------
def _cosine_rows_kernel(x_ref, y_ref, o_ref, *, inv_temp):
    x = x_ref[...].astype(jnp.float32)                              # (tile, H)
    y = y_ref[...].astype(jnp.float32)
    dot = jnp.sum(x * y, axis=-1)                                   # (tile,)
    x_sq = jnp.maximum(jnp.sum(x * x, axis=-1), _EPS_SQ)
    y_sq = jnp.maximum(jnp.sum(y * y, axis=-1), _EPS_SQ)
    sim = dot * jax.lax.rsqrt(x_sq * y_sq) * inv_temp
    o_ref[...] = sim.reshape(1, -1)                                 # lane-dense (1, tile)


def _cosine_rows(xr, yr, inv_temp):
    n, h = xr.shape
    bytes_per_row = h * (xr.dtype.itemsize + yr.dtype.itemsize) + 4
    tile = _row_tile(n, bytes_per_row)
    g = _cdiv(n, tile)

    kernel = functools.partial(_cosine_rows_kernel, inv_temp=float(inv_temp))
    out = pl.pallas_call(
        kernel,
        out_shape=jax.ShapeDtypeStruct((g, tile), jnp.float32),
        grid_spec=pltpu.PrefetchScalarGridSpec(
            num_scalar_prefetch=0,
            grid=(g,),
            in_specs=[
                pl.BlockSpec((tile, h), lambda i: (i, 0)),
                pl.BlockSpec((tile, h), lambda i: (i, 0)),
            ],
            out_specs=pl.BlockSpec((1, tile), lambda i: (i, 0)),
        ),
        compiler_params=pltpu.CompilerParams(
            dimension_semantics=("parallel",),
            vmem_limit_bytes=_VMEM_LIMIT,
        ),
    )(xr, yr)
    return out.reshape(-1)[:n]       # partial-boundary garbage sliced off


# ---------------------------------------------------------------------------
# Wrapper: Similarity(temp)(x, y) == cosine_similarity(x, y, dim=-1) / temp
# ---------------------------------------------------------------------------
def similarity(x, y, temp):
    x = jnp.asarray(x)
    y = jnp.asarray(y)
    out_shape = jnp.broadcast_shapes(x.shape, y.shape)
    if len(out_shape) == 0:
        raise ValueError("cosine similarity over dim=-1 requires >= 1 dimension")

    h = out_shape[-1]
    batch_shape = out_shape[:-1]
    nd = len(out_shape)
    bx = (1,) * (nd - x.ndim) + tuple(x.shape)
    by = (1,) * (nd - y.ndim) + tuple(y.shape)
    inv_temp = 1.0 / float(temp)

    # Fast path: "separable" broadcast (e.g. SimCSE x:(B,1,H) vs y:(1,B,H)).
    # sim = (X/||X||) @ (Y/||Y||)^T / temp on the MXU; O(B*H) HBM reads, no (B,B,H) blowup.
    if bx[-1] == h and by[-1] == h:
        x_dims = [d for d in range(nd - 1) if bx[d] != 1]
        y_dims = [d for d in range(nd - 1) if by[d] != 1]
        separable = (not x_dims) or (not y_dims) or (max(x_dims) < min(y_dims))
        if separable:
            xm = x.reshape(-1, h)                        # (M, H) native dtype
            yn = y.reshape(-1, h)                        # (N, H) native dtype
            m, n = xm.shape[0], yn.shape[0]
            xinv = (_inv_norms(xm) * inv_temp).reshape(m, 1)   # 1/temp folded in
            yinv = _inv_norms(yn).reshape(1, n)
            out = _cosine_outer(xm, yn, xinv, yinv)      # (M, N)
            return out.reshape(batch_shape)

    # General path: row-wise reduction over the last axis.
    # TODO(synk): express non-separable broadcasts via BlockSpec index_map replication
    # instead of materializing jnp.broadcast_to copies in HBM (rare for this module).
    if x.shape != out_shape:
        x = jnp.broadcast_to(x, out_shape)
    if y.shape != out_shape:
        y = jnp.broadcast_to(y, out_shape)
    nrows = int(math.prod(batch_shape)) if batch_shape else 1
    out = _cosine_rows(x.reshape(nrows, h), y.reshape(nrows, h), inv_temp)
    return out.reshape(batch_shape)


if __name__ == "__main__":
    key = jax.random.PRNGKey(0)
    kx, ky, ka, kb = jax.random.split(key, 4)

    temp = 0.05
    B, H = 8, 32

    # --- SimCSE usage: x (B,1,H) vs y (1,B,H) -> (B,B): MXU outer-product path
    x = jax.random.normal(kx, (B, 1, H), dtype=jnp.float32)
    y = jax.random.normal(ky, (1, B, H), dtype=jnp.float32)
    sim = jax.block_until_ready(similarity(x, y, temp))

    xb = jnp.broadcast_to(x, (B, B, H))
    yb = jnp.broadcast_to(y, (B, B, H))
    ref = (jnp.sum(xb * yb, axis=-1)
           / (jnp.maximum(jnp.linalg.norm(xb, axis=-1), _EPS)
              * jnp.maximum(jnp.linalg.norm(yb, axis=-1), _EPS))) / temp
    assert sim.shape == (B, B)
    # Outer path uses a single bf16 MXU pass (f32 accumulate) -> ~2^-8 relative
    # error on the dot products; tolerance set accordingly.
    assert jnp.allclose(sim, ref, atol=3e-2, rtol=3e-2), float(jnp.max(jnp.abs(sim - ref)))

    # --- Same-shape usage -> row-wise path (full f32 math)
    a = jax.random.normal(ka, (2, 6, H), dtype=jnp.float32)
    b = jax.random.normal(kb, (2, 6, H), dtype=jnp.float32)
    sim2 = jax.block_until_ready(similarity(a, b, temp))
    ref2 = (jnp.sum(a * b, axis=-1)
            / (jnp.maximum(jnp.linalg.norm(a, axis=-1), _EPS)
               * jnp.maximum(jnp.linalg.norm(b, axis=-1), _EPS))) / temp
    assert sim2.shape == (2, 6)
    assert jnp.allclose(sim2, ref2, atol=5e-3, rtol=5e-3), float(jnp.max(jnp.abs(sim2 - ref2)))

    print("KERNEL_OK")
</pallas_src>

<mosaic_0001>
module attributes {stable_mosaic.version = 11 : i64} {
  func.func @_inv_norm_kernel(%arg0: i32, %arg1: memref<8x32xf32, #tpu.memory_space<vmem>>, %arg2: memref<1x8xf32, #tpu.memory_space<vmem>>) attributes {dimension_semantics = [#tpu.dimension_semantics<parallel>], iteration_bounds = array<i64: 1>, scalar_prefetch = 0 : i64, scratch_operands = 0 : i64, tpu.core_type = #tpu.core_type<tc>, window_params = [{transform_indices = @transform_0, window_bounds = array<i64: 8, 32>}, {transform_indices = @transform_1, window_bounds = array<i64: 1, 8>}]} {
    %c0 = arith.constant 0 : index
    %c0_0 = arith.constant 0 : index
    %0 = vector.load %arg1[%c0, %c0_0] : memref<8x32xf32, #tpu.memory_space<vmem>>, vector<8x32xf32>
    %1 = arith.mulf %0, %0 : vector<8x32xf32>
    %cst = arith.constant dense<0.000000e+00> : vector<8xf32>
    %2 = vector.multi_reduction <add>, %1, %cst [1] : vector<8x32xf32> to vector<8xf32>
    %cst_1 = arith.constant 1.000000e-16 : f32
    %3 = vector.broadcast %cst_1 : f32 to vector<8xf32>
    %4 = arith.maximumf %2, %3 : vector<8xf32>
    %5 = math.rsqrt %4 : vector<8xf32>
    %6 = vector.shape_cast %5 : vector<8xf32> to vector<1x8xf32>
    %c0_2 = arith.constant 0 : index
    %c0_3 = arith.constant 0 : index
    %7 = vector.load %arg2[%c0_2, %c0_3] : memref<1x8xf32, #tpu.memory_space<vmem>>, vector<1x8xf32>
    tpu.vector_store %arg2[%c0_2, %c0_3], %6 {strides = array<i32>} : memref<1x8xf32, #tpu.memory_space<vmem>>, vector<1x8xf32>,
    return
  }
  func.func @transform_0(%arg0: i32) -> (i32, i32) {
    %c0_i32 = arith.constant 0 : i32
    %c0_i32_0 = arith.constant 0 : i32
    return %arg0, %c0_i32 : i32, i32
  }
  func.func @transform_1(%arg0: i32) -> (i32, i32) {
    %c0_i32 = arith.constant 0 : i32
    %c0_i32_0 = arith.constant 0 : i32
    return %arg0, %c0_i32 : i32, i32
  }
}

</mosaic_0001>

<bundles_post_ra>
// kernel: tpu_custom_call.1
= control target key start
LH: loop header
LB: loop body
LE: loop exit
PB: predicated region body
PF: predicated region fallthrough
CT: control target
= control target key end

     0   :  { %6 = vsyncpa [#allocation3], 0  ;;  %s142_s0 = inlined_call_operand.hbm [shape: f32[8,32], index: 0, kind: input, shape index: {}]   ;;  %s143_s1 = inlined_call_operand.hbm [shape: f32[1,8], index: 1, kind: output, shape index: {}]  }
   0x1   :  { %7 = vsyncpa [#allocation4], 0  ;;  %s106_s6 = smov [#allocation2]   ;;  %s58_s10 = scalar_lea.hbm %s142_s0, 128 }
   0x2   :  { %s14_s7 = sshll.u32 %s106_s6, 4  ;;  %p59_p0 = scmp.ne.s32.totalorder %s142_s0, %s58_s10  ;;  %s15_s7 = int_to_ptr.vmem [resolvable:$true] %s14_s7 }
   0x3   :  { %p62_p1 = scmp.lt.u32.totalorder %s58_s10, %s142_s0 }
   0x5   :  { %p64_p2 = pnand %p62_p1, %p59_p0 }
   0x7   :  { %67 = shalt.err (!%p64_p2)
}
   0x8   :  { %s68_s15 = scalar_lea.vmem %s15_s7, 128  ;;  %p73_p4 = scmp.lt.s32.totalorder %s15_s7, %s15_s7 }
   0x9   :  { %p69_p3 = scmp.ne.s32.totalorder %s15_s7, %s68_s15  ;;  %p74_p5 = scmp.lt.s32.totalorder %s68_s15, %s68_s15 }
   0xb   :  { %p75_p6 = por %p74_p5, %p73_p4 }
   0xd   :  { %p76_p7 = pnand %p75_p6, %p69_p3 }
   0xf   :  { %79 = shalt.err (!%p76_p7)
}
  0x10   :  { %17 = dma.hbm_to_vmem [thread:$0]  %s142_s0, 128, %s15_s7, [#allocation3]  }
  0x11   :  { %102 = dma.done.wait [#allocation3], 128  }
  0x12   :  { %103 = vsyncadd [#allocation3], 4294967168  ;;  %v21_v0 = vld [vmem:[#allocation2] sm:$0xff]  ;;  %vm23_vm0 = vcmask 261120   ;;  %v30_v5 = vlaneseq  ;;  %s107_s18 = smov [#allocation5]   ;;  %vm37_vm1 = vcmask 57344  }
  0x13   :  { %v22_v1 = vmul.f32 %v21_v0, %v21_v0  ;;  %s45_s19 = sshll.u32 %s107_s18, 4  ;;  %s46_s19 = int_to_ptr.vmem [resolvable:$true] %s45_s19 }
  0x14   :  { %v31_v6 = vand.u32 127, %v30_v5  ;;  %v33_v7 = vshrl.u32 %v30_v5, 7  ;;  %s80_s0 = scalar_lea.vmem %s46_s19, 16  ;;  %s84_s20 = scalar_lea.vmem %s46_s19, 32 }
  0x15   :  { %v24_v2 = vsel %vm23_vm0, %v22_v1, 0.0  ;;  %p81_p8 = scmp.ne.s32.totalorder %s46_s19, %s80_s0  ;;  %p85_p9 = scmp.lt.s32.totalorder %s46_s19, %s46_s19 }
  0x16   :  { %25 = vadd.xlane.f32.xlu0 %v24_v2  ;;  %v34_v8 = vsub.s32 %v31_v6, %v33_v7  ;;  %p86_p10 = scmp.lt.s32.totalorder %s84_s20, %s80_s0 }
  0x18   :  { %p87_p11 = por %p86_p10, %p85_p9 }
  0x1a   :  { %p88_p12 = pnand %p87_p11, %p81_p8 }
  0xa3   :  { %v26_v3 = vpop.xlane.xlu0 %25 }
  0xa4   :  { %v27_v4 = vmax.f32 %v26_v3, 1e-16 }
  0xa6   :  { %56 = vrsqrt.f32 %v27_v4 }
  0xb0   :  { %v57_v9 = vpop.eup %56 }
  0xb1   :  { %v35_v10 = vrot.slane %v57_v9, %v34_v8 }
  0xb3   :  { %38 = vst.msk [vmem:[#allocation5] sm:$0x1] %vm37_vm1, %v35_v10 }
  0xb4   :  { %91 = shalt.err (!%p88_p12)
}
  0xb5   :  { %s92_s23 = scalar_lea.hbm %s143_s1, 16 }
  0xb6   :  { %p93_p13 = scmp.ne.s32.totalorder %s143_s1, %s92_s23  ;;  %p96_p0 = scmp.lt.u32.totalorder %s92_s23, %s143_s1 }
  0xb8   :  { %p98_p1 = pnand %p96_p0, %p93_p13 }
  0xba   :  { %101 = shalt.err (!%p98_p1)
}
  0xbb   :  { %48 = dma.vmem_to_hbm [thread:$0]  %s46_s19, 16, %s143_s1, [#allocation4]  }
  0xbc   :  { %104 = dma.done.wait [#allocation4], 16  }
  0xbd   :  { %105 = vsyncadd [#allocation4], 4294967280 }
  0xbe   :  { %52 = vsyncpa [#allocation3], 1 }
  0xbf   :  { %53 = vsyncpa [#allocation4], 1 }

</bundles_post_ra>
